<compile_context>
chip_gen: v7x
topology: tpu7x:2x2x1
jax: 0.10.0
libtpu: 0.0.40
codegen_flags: <defaults>
</compile_context>

<pallas_src>
import functools

import jax
import jax.numpy as jnp
from jax.experimental import pallas as pl
from jax.experimental.pallas import tpu as pltpu


# ----------------------------- config ---------------------------------------
VOCAB_SIZE = 50
EMBED_DIM = 32          # E
SEQ_LEN = 16            # L
NUM_FILTERS = 8         # F
KERNEL_SIZES = (3, 4, 5)
NUM_CLASSES = 4         # C
BATCH = 2
DROPOUT_PROB = 0.5      # TODO(synk): dropout is identity (inference mode).

F3 = NUM_FILTERS * len(KERNEL_SIZES)   # 3F = 24 stacked filters
KMAX = max(KERNEL_SIZES)               # 5 taps after zero-padding filters
K_PAD = 256                            # fused contraction dim (KMAX*V=250 -> 256)
NCOL = 128                             # lane-dense feature / logits width


# ----------------------------- kernel ---------------------------------------
def _cnn_kernel(batch, l_pad, n_rows, kmax, vocab,
                tok_ref,     # (tok_rows, 1) int32  flat tokens, stride l_pad/sample
                t_ref,       # (K_PAD, NCOL)        fused emb@conv table (zero-padded)
                cb_ref,      # (1, NCOL)            stacked conv biases (zero-padded)
                mask_ref,    # (l_pad, NCOL)        1.0 where position valid per branch
                wfc_ref,     # (NCOL, NCOL)         FC weights (zero-padded)
                bfc_ref,     # (1, NCOL)            FC bias (zero-padded)
                out_ref):    # (B_pad, NCOL)        logits block (sliced in wrapper)
    kdim = t_ref.shape[0]
    ncol = t_ref.shape[1]
    b_pad = out_ref.shape[0]

    # Shifted one-hot gather: row (b, p) gets a 1.0 at column t*V + tok[b, p+t]
    # for every tap t.  Taps that run past a sample's end only ever hit
    # zero-weight columns of the fused table or positions the pool mask removes,
    # so no sentinel handling is needed and out-of-range ids cannot read OOB.
    col_ids = jax.lax.broadcasted_iota(jnp.int32, (n_rows, kdim), 1)
    onehot = None
    for t in range(kmax):
        ids = tok_ref[pl.ds(t, n_rows), :] + t * vocab           # (n_rows, 1)
        hit = (col_ids == ids).astype(jnp.float32)               # (n_rows, kdim)
        onehot = hit if onehot is None else onehot + hit

    # Fused embedding lookup + all conv branches/taps: ONE MXU matmul.
    acc = jnp.dot(onehot, t_ref[...], preferred_element_type=jnp.float32)
    y = jnp.maximum(acc + cb_ref[...], 0.0)                      # bias + ReLU

    # Masked global max pool: single reduce over the position axis.  Valid
    # because values are >= 0 post-ReLU and invalid positions are zeroed.
    y = y.reshape(batch, l_pad, ncol) * mask_ref[...][None, :, :]
    feat = jnp.max(y, axis=1)                                    # (B, NCOL)

    # Pad batch rows up to the 8-aligned, lane-dense output block.
    if b_pad > batch:
        feat = jnp.concatenate(
            [feat, jnp.zeros((b_pad - batch, ncol), jnp.float32)], axis=0)

    # FC head: one matmul, one full-block lane-dense store.
    out_ref[...] = (jnp.dot(feat, wfc_ref[...],
                            preferred_element_type=jnp.float32) + bfc_ref[...])


# ----------------------------- wrapper ---------------------------------------
def cnn_classifier_forward(tokens, params):
    """tokens: (B, L) int32. Returns logits (B, C) float32."""
    E, F, C, V = EMBED_DIM, NUM_FILTERS, NUM_CLASSES, VOCAB_SIZE
    B, L = tokens.shape
    l_pad = ((L + 7) // 8) * 8              # per-sample row stride, 8-aligned
    n_rows = B * l_pad
    b_pad = ((B + 7) // 8) * 8              # 8-aligned output rows
    assert KMAX * V <= K_PAD and F3 <= NCOL and C <= NCOL

    # --- one-time parameter repack (plain JAX, cacheable per model) ---------
    w_stack = jnp.zeros((KMAX, E, F3), jnp.float32)
    for j, k in enumerate(KERNEL_SIZES):
        w = params[f"conv{k}_w"]                               # (F, E, k)
        w_stack = w_stack.at[:k, :, j * F:(j + 1) * F].set(
            jnp.transpose(w, (2, 1, 0)).astype(jnp.float32))   # taps >= k stay 0

    # Fused gather+conv table: T[t*V + v, col] = sum_e emb[v, e] * w_stack[t, e, col]
    emb = params["embedding"].astype(jnp.float32)              # (V, E)
    t_tbl = jnp.einsum("ve,tec->tvc", emb, w_stack,
                       precision=jax.lax.Precision.HIGHEST).reshape(KMAX * V, F3)
    t_pad = jnp.zeros((K_PAD, NCOL), jnp.float32).at[:KMAX * V, :F3].set(t_tbl)

    conv_b = jnp.concatenate(
        [params[f"conv{k}_b"] for k in KERNEL_SIZES]).astype(jnp.float32)
    cb_pad = jnp.zeros((1, NCOL), jnp.float32).at[0, :F3].set(conv_b)

    pos = jnp.arange(l_pad, dtype=jnp.int32)[:, None]                 # (l_pad,1)
    limit = jnp.repeat(jnp.asarray([L - k for k in KERNEL_SIZES], jnp.int32),
                       F)[None, :]                                    # (1, 3F)
    mask = (pos <= limit).astype(jnp.float32)                         # (l_pad,3F)
    mask_pad = jnp.zeros((l_pad, NCOL), jnp.float32).at[:, :F3].set(mask)

    fc_w_pad = jnp.zeros((NCOL, NCOL), jnp.float32).at[:F3, :C].set(
        params["fc_w"].T.astype(jnp.float32))
    fc_b_pad = jnp.zeros((1, NCOL), jnp.float32).at[0, :C].set(
        params["fc_b"].astype(jnp.float32))

    # --- token layout (plumbing only): flat, per-sample stride l_pad, tail pad ---
    tok_rows = ((n_rows + KMAX - 1 + 7) // 8) * 8
    tok_p = jnp.pad(tokens.astype(jnp.int32),
                    ((0, 0), (0, l_pad - L))).reshape(-1)             # (n_rows,)
    tok_flat = jnp.zeros((tok_rows, 1), jnp.int32).at[:n_rows, 0].set(tok_p)

    kernel = functools.partial(_cnn_kernel, B, l_pad, n_rows, KMAX, V)

    grid_spec = pltpu.PrefetchScalarGridSpec(
        num_scalar_prefetch=0,
        grid=(1,),                          # single step: whole batch at once
        in_specs=[
            pl.BlockSpec((tok_rows, 1), lambda i: (0, 0)),
            pl.BlockSpec((K_PAD, NCOL), lambda i: (0, 0)),
            pl.BlockSpec((1, NCOL), lambda i: (0, 0)),
            pl.BlockSpec((l_pad, NCOL), lambda i: (0, 0)),
            pl.BlockSpec((NCOL, NCOL), lambda i: (0, 0)),
            pl.BlockSpec((1, NCOL), lambda i: (0, 0)),
        ],
        out_specs=pl.BlockSpec((b_pad, NCOL), lambda i: (0, 0)),
    )

    flops = 2 * n_rows * K_PAD * NCOL + 2 * b_pad * NCOL * NCOL
    bytes_accessed = 4 * (tok_rows + K_PAD * NCOL + NCOL + l_pad * NCOL
                          + NCOL * NCOL + NCOL + b_pad * NCOL)
    cost = pl.CostEstimate(flops=flops, transcendentals=0,
                           bytes_accessed=bytes_accessed)

    out = pl.pallas_call(
        kernel,
        out_shape=jax.ShapeDtypeStruct((b_pad, NCOL), jnp.float32),
        grid_spec=grid_spec,
        compiler_params=pltpu.CompilerParams(
            dimension_semantics=("arbitrary",)),
        cost_estimate=cost,
    )(tok_flat, t_pad, cb_pad, mask_pad, fc_w_pad, fc_b_pad)

    return out[:B, :C]


# ----------------------------- reference (pure JAX) ---------------------------
def reference_forward(tokens, params):
    pp = jax.lax.Precision.HIGHEST
    emb = jnp.take(params["embedding"], tokens, axis=0)     # (B, L, E)
    x = jnp.transpose(emb, (0, 2, 1))                       # (B, E, L)
    feats = []
    for k in KERNEL_SIZES:
        w = params[f"conv{k}_w"]                            # (F, E, k)
        b = params[f"conv{k}_b"]                            # (F,)
        L_out = SEQ_LEN - k + 1
        y = jnp.zeros((tokens.shape[0], NUM_FILTERS, L_out), jnp.float32)
        for tap in range(k):
            y = y + jnp.einsum("fe,bel->bfl", w[:, :, tap],
                               x[:, :, tap:tap + L_out], precision=pp)
        y = jax.nn.relu(y + b[None, :, None])
        feats.append(jnp.max(y, axis=-1))                   # (B, F)
    feat = jnp.concatenate(feats, axis=1)                   # (B, 3F)
    return jnp.dot(feat, params["fc_w"].T, precision=pp) + params["fc_b"]


# ----------------------------- params / main ----------------------------------
def make_params(key):
    keys = jax.random.split(key, 3 + 2 * len(KERNEL_SIZES))
    params = {}
    params["embedding"] = jax.random.normal(
        keys[0], (VOCAB_SIZE, EMBED_DIM), jnp.float32) * 0.1
    i = 1
    for k in KERNEL_SIZES:
        params[f"conv{k}_w"] = jax.random.normal(
            keys[i], (NUM_FILTERS, EMBED_DIM, k), jnp.float32) * 0.1
        params[f"conv{k}_b"] = jax.random.normal(
            keys[i + 1], (NUM_FILTERS,), jnp.float32) * 0.1
        i += 2
    params["fc_w"] = jax.random.normal(
        keys[i], (NUM_CLASSES, F3), jnp.float32) * 0.1
    params["fc_b"] = jax.random.normal(
        keys[i + 1], (NUM_CLASSES,), jnp.float32) * 0.1
    return params


if __name__ == "__main__":
    key = jax.random.PRNGKey(0)
    k_tok, k_par = jax.random.split(key)
    tokens = jax.random.randint(k_tok, (BATCH, SEQ_LEN), 0, VOCAB_SIZE, jnp.int32)
    params = make_params(k_par)

    logits = jax.block_until_ready(cnn_classifier_forward(tokens, params))

    ref = reference_forward(tokens, params)
    assert logits.shape == (BATCH, NUM_CLASSES)
    assert jnp.allclose(logits, ref, atol=1e-4, rtol=1e-4), (logits, ref)
    print("KERNEL_OK")
</pallas_src>

<mosaic_0001>
module attributes {stable_mosaic.version = 11 : i64} {
  func.func @_cnn_kernel(%arg0: i32, %arg1: memref<40x1xi32, #tpu.memory_space<vmem>>, %arg2: memref<256x128xf32, #tpu.memory_space<vmem>>, %arg3: memref<1x128xf32, #tpu.memory_space<vmem>>, %arg4: memref<16x128xf32, #tpu.memory_space<vmem>>, %arg5: memref<128x128xf32, #tpu.memory_space<vmem>>, %arg6: memref<1x128xf32, #tpu.memory_space<vmem>>, %arg7: memref<8x128xf32, #tpu.memory_space<vmem>>) attributes {dimension_semantics = [#tpu.dimension_semantics<arbitrary>], iteration_bounds = array<i64: 1>, scalar_prefetch = 0 : i64, scratch_operands = 0 : i64, tpu.core_type = #tpu.core_type<tc>, window_params = [{pipeline_mode = #tpu.pipeline_mode<synchronous>, transform_indices = @transform_0, window_bounds = array<i64: 40, 1>}, {pipeline_mode = #tpu.pipeline_mode<synchronous>, transform_indices = @transform_1, window_bounds = array<i64: 256, 128>}, {pipeline_mode = #tpu.pipeline_mode<synchronous>, transform_indices = @transform_2, window_bounds = array<i64: 1, 128>}, {pipeline_mode = #tpu.pipeline_mode<synchronous>, transform_indices = @transform_3, window_bounds = array<i64: 16, 128>}, {pipeline_mode = #tpu.pipeline_mode<synchronous>, transform_indices = @transform_4, window_bounds = array<i64: 128, 128>}, {pipeline_mode = #tpu.pipeline_mode<synchronous>, transform_indices = @transform_5, window_bounds = array<i64: 1, 128>}, {pipeline_mode = #tpu.pipeline_mode<synchronous>, transform_indices = @transform_6, window_bounds = array<i64: 8, 128>}]} {
    %0 = tpu.iota {dimensions = array<i32: 1>} : vector<32x256xi32>
    %c0 = arith.constant 0 : index
    %c0_0 = arith.constant 0 : index
    %1 = vector.load %arg1[%c0, %c0_0] : memref<40x1xi32, #tpu.memory_space<vmem>>, vector<32x1xi32>
    %c0_i32 = arith.constant 0 : i32
    %2 = vector.broadcast %c0_i32 : i32 to vector<32x1xi32>
    %3 = arith.addi %1, %2 : vector<32x1xi32>
    %4 = vector.broadcast %3 : vector<32x1xi32> to vector<32x256xi32>
    %5 = arith.cmpi eq, %0, %4 : vector<32x256xi32>
    %6 = arith.extui %5 : vector<32x256xi1> to vector<32x256xi32>
    %7 = arith.sitofp %6 : vector<32x256xi32> to vector<32x256xf32>
    %c1 = arith.constant 1 : index
    %c0_1 = arith.constant 0 : index
    %8 = vector.load %arg1[%c1, %c0_1] : memref<40x1xi32, #tpu.memory_space<vmem>>, vector<32x1xi32>
    %c50_i32 = arith.constant 50 : i32
    %9 = vector.broadcast %c50_i32 : i32 to vector<32x1xi32>
    %10 = arith.addi %8, %9 : vector<32x1xi32>
    %11 = vector.broadcast %10 : vector<32x1xi32> to vector<32x256xi32>
    %12 = arith.cmpi eq, %0, %11 : vector<32x256xi32>
    %13 = arith.extui %12 : vector<32x256xi1> to vector<32x256xi32>
    %14 = arith.sitofp %13 : vector<32x256xi32> to vector<32x256xf32>
    %15 = arith.addf %7, %14 : vector<32x256xf32>
    %c2 = arith.constant 2 : index
    %c0_2 = arith.constant 0 : index
    %16 = vector.load %arg1[%c2, %c0_2] : memref<40x1xi32, #tpu.memory_space<vmem>>, vector<32x1xi32>
    %c100_i32 = arith.constant 100 : i32
    %17 = vector.broadcast %c100_i32 : i32 to vector<32x1xi32>
    %18 = arith.addi %16, %17 : vector<32x1xi32>
    %19 = vector.broadcast %18 : vector<32x1xi32> to vector<32x256xi32>
    %20 = arith.cmpi eq, %0, %19 : vector<32x256xi32>
    %21 = arith.extui %20 : vector<32x256xi1> to vector<32x256xi32>
    %22 = arith.sitofp %21 : vector<32x256xi32> to vector<32x256xf32>
    %23 = arith.addf %15, %22 : vector<32x256xf32>
    %c3 = arith.constant 3 : index
    %c0_3 = arith.constant 0 : index
    %24 = vector.load %arg1[%c3, %c0_3] : memref<40x1xi32, #tpu.memory_space<vmem>>, vector<32x1xi32>
    %c150_i32 = arith.constant 150 : i32
    %25 = vector.broadcast %c150_i32 : i32 to vector<32x1xi32>
    %26 = arith.addi %24, %25 : vector<32x1xi32>
    %27 = vector.broadcast %26 : vector<32x1xi32> to vector<32x256xi32>
    %28 = arith.cmpi eq, %0, %27 : vector<32x256xi32>
    %29 = arith.extui %28 : vector<32x256xi1> to vector<32x256xi32>
    %30 = arith.sitofp %29 : vector<32x256xi32> to vector<32x256xf32>
    %31 = arith.addf %23, %30 : vector<32x256xf32>
    %c4 = arith.constant 4 : index
    %c0_4 = arith.constant 0 : index
    %32 = vector.load %arg1[%c4, %c0_4] : memref<40x1xi32, #tpu.memory_space<vmem>>, vector<32x1xi32>
    %c200_i32 = arith.constant 200 : i32
    %33 = vector.broadcast %c200_i32 : i32 to vector<32x1xi32>
    %34 = arith.addi %32, %33 : vector<32x1xi32>
    %35 = vector.broadcast %34 : vector<32x1xi32> to vector<32x256xi32>
    %36 = arith.cmpi eq, %0, %35 : vector<32x256xi32>
    %37 = arith.extui %36 : vector<32x256xi1> to vector<32x256xi32>
    %38 = arith.sitofp %37 : vector<32x256xi32> to vector<32x256xf32>
    %39 = arith.addf %31, %38 : vector<32x256xf32>
    %c0_5 = arith.constant 0 : index
    %c0_6 = arith.constant 0 : index
    %40 = vector.load %arg2[%c0_5, %c0_6] : memref<256x128xf32, #tpu.memory_space<vmem>>, vector<256x128xf32>
    %cst = arith.constant dense<0.000000e+00> : vector<32x128xf32>
    %41 = tpu.matmul %39, %40, %cst {dimension_numbers = #tpu.dot_dimension_numbers<[1], [0], [0], [1], [0, 0, 1, 1], [], []>} : vector<32x256xf32>, vector<256x128xf32>, vector<32x128xf32> -> vector<32x128xf32>
    %c0_7 = arith.constant 0 : index
    %c0_8 = arith.constant 0 : index
    %42 = vector.load %arg3[%c0_7, %c0_8] : memref<1x128xf32, #tpu.memory_space<vmem>>, vector<1x128xf32>
    %43 = vector.broadcast %42 : vector<1x128xf32> to vector<32x128xf32>
    %44 = arith.addf %41, %43 : vector<32x128xf32>
    %cst_9 = arith.constant 0.000000e+00 : f32
    %45 = vector.broadcast %cst_9 : f32 to vector<32x128xf32>
    %46 = arith.maximumf %44, %45 : vector<32x128xf32>
    %47 = vector.shape_cast %46 : vector<32x128xf32> to vector<2x16x128xf32>
    %c0_10 = arith.constant 0 : index
    %c0_11 = arith.constant 0 : index
    %48 = vector.load %arg4[%c0_10, %c0_11] : memref<16x128xf32, #tpu.memory_space<vmem>>, vector<16x128xf32>
    %49 = vector.shape_cast %48 : vector<16x128xf32> to vector<1x16x128xf32>
    %50 = vector.broadcast %49 : vector<1x16x128xf32> to vector<2x16x128xf32>
    %51 = arith.mulf %47, %50 : vector<2x16x128xf32>
    %cst_12 = arith.constant dense<0xFF800000> : vector<2x128xf32>
    %52 = vector.multi_reduction <maximumf>, %51, %cst_12 [1] : vector<2x16x128xf32> to vector<2x128xf32>
    %cst_13 = arith.constant 0.000000e+00 : f32
    %53 = vector.broadcast %cst_13 : f32 to vector<6x128xf32>
    %54 = tpu.concatenate %52, %53 in 0 : vector<2x128xf32>, vector<6x128xf32> -> vector<8x128xf32>
    %c0_14 = arith.constant 0 : index
    %c0_15 = arith.constant 0 : index
    %55 = vector.load %arg5[%c0_14, %c0_15] : memref<128x128xf32, #tpu.memory_space<vmem>>, vector<128x128xf32>
    %cst_16 = arith.constant dense<0.000000e+00> : vector<8x128xf32>
    %56 = tpu.matmul %54, %55, %cst_16 {dimension_numbers = #tpu.dot_dimension_numbers<[1], [0], [0], [1], [0, 0, 1, 1], [], []>} : vector<8x128xf32>, vector<128x128xf32>, vector<8x128xf32> -> vector<8x128xf32>
    %c0_17 = arith.constant 0 : index
    %c0_18 = arith.constant 0 : index
    %57 = vector.load %arg6[%c0_17, %c0_18] : memref<1x128xf32, #tpu.memory_space<vmem>>, vector<1x128xf32>
    %58 = vector.broadcast %57 : vector<1x128xf32> to vector<8x128xf32>
    %59 = arith.addf %56, %58 : vector<8x128xf32>
    %c0_19 = arith.constant 0 : index
    %c0_20 = arith.constant 0 : index
    %60 = vector.load %arg7[%c0_19, %c0_20] : memref<8x128xf32, #tpu.memory_space<vmem>>, vector<8x128xf32>
    tpu.vector_store %arg7[%c0_19, %c0_20], %59 {strides = array<i32>} : memref<8x128xf32, #tpu.memory_space<vmem>>, vector<8x128xf32>,
    return
  }
  func.func @transform_0(%arg0: i32) -> (i32, i32) {
    %c0_i32 = arith.constant 0 : i32
    %c0_i32_0 = arith.constant 0 : i32
    %c0_i32_1 = arith.constant 0 : i32
    return %c0_i32, %c0_i32_0 : i32, i32
  }
  func.func @transform_1(%arg0: i32) -> (i32, i32) {
    %c0_i32 = arith.constant 0 : i32
    %c0_i32_0 = arith.constant 0 : i32
    %c0_i32_1 = arith.constant 0 : i32
    return %c0_i32, %c0_i32_0 : i32, i32
  }
  func.func @transform_2(%arg0: i32) -> (i32, i32) {
    %c0_i32 = arith.constant 0 : i32
    %c0_i32_0 = arith.constant 0 : i32
    %c0_i32_1 = arith.constant 0 : i32
    return %c0_i32, %c0_i32_0 : i32, i32
  }
  func.func @transform_3(%arg0: i32) -> (i32, i32) {
    %c0_i32 = arith.constant 0 : i32
    %c0_i32_0 = arith.constant 0 : i32
    %c0_i32_1 = arith.constant 0 : i32
    return %c0_i32, %c0_i32_0 : i32, i32
  }
  func.func @transform_4(%arg0: i32) -> (i32, i32) {
    %c0_i32 = arith.constant 0 : i32
    %c0_i32_0 = arith.constant 0 : i32
    %c0_i32_1 = arith.constant 0 : i32
    return %c0_i32, %c0_i32_0 : i32, i32
  }
  func.func @transform_5(%arg0: i32) -> (i32, i32) {
    %c0_i32 = arith.constant 0 : i32
    %c0_i32_0 = arith.constant 0 : i32
    %c0_i32_1 = arith.constant 0 : i32
    return %c0_i32, %c0_i32_0 : i32, i32
  }
  func.func @transform_6(%arg0: i32) -> (i32, i32) {
    %c0_i32 = arith.constant 0 : i32
    %c0_i32_0 = arith.constant 0 : i32
    %c0_i32_1 = arith.constant 0 : i32
    return %c0_i32, %c0_i32_0 : i32, i32
  }
}

</mosaic_0001>

<bundles_post_ra>
// kernel: tpu_custom_call.1
= control target key start
LH: loop header
LB: loop body
LE: loop exit
PB: predicated region body
PF: predicated region fallthrough
CT: control target
= control target key end

     0   :  { %11 = vsyncpa [#allocation3], 0  ;;  %s1084_s0 = inlined_call_operand.vmem [shape: s32[40,1], index: 0, kind: input, shape index: {}]   ;;  %s1085_s1 = inlined_call_operand.hbm [shape: f32[256,128], index: 1, kind: input, shape index: {}]   ;;  %s1086_s2 = inlined_call_operand.vmem [shape: f32[1,128], index: 2, kind: input, shape index: {}]   ;;  %s1087_s3 = inlined_call_operand.vmem [shape: f32[16,128], index: 3, kind: input, shape index: {}]   ;;  %s1088_s4 = inlined_call_operand.hbm [shape: f32[128,128], index: 4, kind: input, shape index: {}]   ;;  %s1089_s5 = inlined_call_operand.vmem [shape: f32[1,128], index: 5, kind: input, shape index: {}]   ;;  %s1090_s6 = inlined_call_operand.hbm [shape: f32[8,128], index: 6, kind: output, shape index: {}]  }
   0x1   :  { %12 = vsyncpa [#allocation6], 0 }
   0x2   :  { %13 = vsyncpa [#allocation4], 0  ;;  %s846_s21 = smov [#allocation2]   ;;  %s774_s25 = scalar_lea.hbm %s1085_s1, 4096 }
   0x3   :  { %s21_s22 = sshll.u32 %s846_s21, 4  ;;  %p775_p0 = scmp.ne.s32.totalorder %s1085_s1, %s774_s25  ;;  %s22_s22 = int_to_ptr.vmem [resolvable:$true] %s21_s22 }
   0x4   :  { %p778_p1 = scmp.lt.u32.totalorder %s774_s25, %s1085_s1 }
   0x6   :  { %p780_p2 = pnand %p778_p1, %p775_p0 }
   0x8   :  { %783 = shalt.err (!%p780_p2)
}
   0x9   :  { %s784_s30 = scalar_lea.vmem %s22_s22, 4096  ;;  %p789_p4 = scmp.lt.s32.totalorder %s22_s22, %s22_s22 }
   0xa   :  { %p785_p3 = scmp.ne.s32.totalorder %s22_s22, %s784_s30  ;;  %p790_p5 = scmp.lt.s32.totalorder %s784_s30, %s784_s30 }
   0xc   :  { %p791_p6 = por %p790_p5, %p789_p4 }
   0xe   :  { %p792_p7 = pnand %p791_p6, %p785_p3 }
  0x10   :  { %795 = shalt.err (!%p792_p7)
}
  0x11   :  { %s847_s7 = smov 128   ;;  %s848_s8 = smov 8  }
  0x12   :  { %27 = dma.hbm_to_vmem [thread:$0]  %s1085_s1, 4096, %s22_s22, [#allocation3], %s847_s7, %s847_s7, %s848_s8  }
  0x13   :  { %s849_s11 = smov [#allocation5]   ;;  %s796_s15 = scalar_lea.hbm %s1088_s4, 2048 }
  0x14   :  { %s37_s12 = sshll.u32 %s849_s11, 4  ;;  %p797_p8 = scmp.ne.s32.totalorder %s1088_s4, %s796_s15  ;;  %s38_s12 = int_to_ptr.vmem [resolvable:$true] %s37_s12 }
  0x15   :  { %p800_p9 = scmp.lt.u32.totalorder %s796_s15, %s1088_s4 }
  0x17   :  { %p802_p10 = pnand %p800_p9, %p797_p8 }
  0x19   :  { %805 = shalt.err (!%p802_p10)
}
  0x1a   :  { %s806_s20 = scalar_lea.vmem %s38_s12, 2048  ;;  %p811_p12 = scmp.lt.s32.totalorder %s38_s12, %s38_s12 }
  0x1b   :  { %p807_p11 = scmp.ne.s32.totalorder %s38_s12, %s806_s20  ;;  %p812_p13 = scmp.lt.s32.totalorder %s806_s20, %s806_s20 }
  0x1d   :  { %p813_p0 = por %p812_p13, %p811_p12 }
  0x1f   :  { %p814_p1 = pnand %p813_p0, %p807_p11 }
  0x21   :  { %817 = shalt.err (!%p814_p1)
}
  0x22   :  { %43 = dma.hbm_to_vmem [thread:$0]  %s1088_s4, 2048, %s38_s12, [#allocation6], %s847_s7, %s847_s7, %s848_s8  }
  0x23   :  { %840 = dma.done.wait [#allocation3], 4096  }
  0x24   :  { %841 = vsyncadd [#allocation3], 4294963200 }
  0x25   :  { %842 = dma.done.wait [#allocation6], 2048  }
  0x26   :  { %843 = vsyncadd [#allocation6], 4294965248  ;;  %v850_v0 = vmov 0   ;;  %v56_v1 = vld [vmem:[%s1084_s0 + $0x8] sm:$0xff]  ;;  %v55_v2 = vld [vmem:[%s1084_s0] sm:$0xff]  ;;  %s854_s16 = smov [#allocation7]  }
  0x27   :  { %773 = vset.pattern.permute.xlu1 %v850_v0  ;;  %772 = vset.pattern.permute.xlu0 %v850_v0  ;;  %v147_v3 = vld [vmem:[%s1084_s0 + $0x2] sm:$0xff]  ;;  %v148_v12 = vld [vmem:[%s1084_s0 + $0xa] sm:$0xff]  ;;  %v322_v20 = vld [vmem:[#allocation2 + $0x98] sm:$0xff]  ;;  %s558_s17 = sshll.u32 %s854_s16, 4  ;;  %s559_s17 = int_to_ptr.vmem [resolvable:$true] %s558_s17 }
  0x28   :  { %63 = vperm.xlu1 %773, %v56_v1   ;;  %60 = vperm.xlu0 %772, %v55_v2   ;;  %v151_v4 = vadd.s32 100, %v147_v3  ;;  %v95_v5 = vld [vmem:[%s1084_s0 + $0x1] sm:$0xff]  ;;  %v96_v8 = vld [vmem:[%s1084_s0 + $0x9] sm:$0xff]  ;;  %v152_v23 = vadd.s32 100, %v148_v12  ;;  %v306_v25 = vld [vmem:[#allocation2 + $0x18] sm:$0xff]  ;;  %s818_s18 = scalar_lea.vmem %s559_s17, 128  ;;  %p823_p3 = scmp.lt.s32.totalorder %s559_s17, %s559_s17 }
  0x29   :  { %v99_v6 = vadd.s32 50, %v95_v5  ;;  %v199_v7 = vld [vmem:[%s1084_s0 + $0x3] sm:$0xff]  ;;  %v100_v10 = vadd.s32 50, %v96_v8  ;;  %v321_v19 = vld [vmem:[#allocation2 + $0x90] sm:$0xff]  ;;  %v326_v35 = vld [vmem:[#allocation2 + $0xb8] sm:$0xff]  ;;  %p819_p2 = scmp.ne.s32.totalorder %s559_s17, %s818_s18  ;;  %p824_p4 = scmp.lt.s32.totalorder %s818_s18, %s818_s18 }
  0x2a   :  { %v203_v9 = vadd.s32 150, %v199_v7  ;;  %v251_v11 = vld [vmem:[%s1084_s0 + $0x4] sm:$0xff]  ;;  %v305_v21 = vld [vmem:[#allocation2 + $0x10] sm:$0xff]  ;;  %v711_v24 = vpack.c.bf16 %v322_v20, %v321_v19  ;;  %v310_v42 = vld [vmem:[#allocation2 + $0x38] sm:$0xff] }
  0x2b   :  { %v319_v13 = vld [vmem:[#allocation2 + $0x80] sm:$0xff]  ;;  %v320_v14 = vld [vmem:[#allocation2 + $0x88] sm:$0xff]  ;;  %v255_v22 = vadd.s32 200, %v251_v11  ;;  %v97_v28 = vld [vmem:[%s1084_s0 + $0x11] sm:$0xff]  ;;  %v713_v29 = vpack.c.bf16 %v306_v25, %v305_v21  ;;  %v52_v21 = vlaneseq  ;;  %p825_p5 = por %p824_p4, %p823_p3 }
  0x2c   :  { %156 = vperm.xlu1 %773, %v151_v4   ;;  %104 = vperm.xlu0 %772, %v99_v6   ;;  %v303_v15 = vld [vmem:[#allocation2] sm:$0xff]  ;;  %v304_v16 = vld [vmem:[#allocation2 + $0x8] sm:$0xff]  ;;  %v707_v17 = vpack.c.bf16 %v320_v14, %v319_v13  ;;  %v101_v33 = vadd.s32 50, %v97_v28  ;;  %v325_v34 = vld [vmem:[#allocation2 + $0xb0] sm:$0xff]  ;;  %v851_v28 = vmov 0.0  }
  0x2d   :  { %v709_v18 = vpack.c.bf16 %v304_v16, %v303_v15  ;;  %v323_v26 = vld [vmem:[#allocation2 + $0xa0] sm:$0xff]  ;;  %v324_v27 = vld [vmem:[#allocation2 + $0xa8] sm:$0xff]  ;;  %v57_v36 = vld [vmem:[%s1084_s0 + $0x10] sm:$0xff]  ;;  %v719_v40 = vpack.c.bf16 %v326_v35, %v325_v34  ;;  %p826_p6 = pnand %p825_p5, %p819_p2 }
  0x2e   :  { %708 = vmatprep.subr.bf16.mxu0 %v707_v17  ;;  %v715_v30 = vpack.c.bf16 %v324_v27, %v323_v26  ;;  %v307_v31 = vld [vmem:[#allocation2 + $0x20] sm:$0xff]  ;;  %v308_v32 = vld [vmem:[#allocation2 + $0x28] sm:$0xff]  ;;  %v149_v37 = vld [vmem:[%s1084_s0 + $0x12] sm:$0xff] }
  0x2f   :  { %710 = vmatpush3.bf16.msra.mxu0 %v709_v18  ;;  %v200_v38 = vld [vmem:[%s1084_s0 + $0xb] sm:$0xff]  ;;  %v717_v39 = vpack.c.bf16 %v308_v32, %v307_v31  ;;  %v153_v43 = vadd.s32 100, %v149_v37  ;;  %v327_v45 = vld [vmem:[#allocation2 + $0xc0] sm:$0xff]  ;;  %v330_v54 = vld [vmem:[#allocation2 + $0xd8] sm:$0xff] }
  0x30   :  { %208 = vperm.xlu1 %773, %v203_v9   ;;  %107 = vperm.xlu0 %772, %v100_v10   ;;  %v309_v41 = vld [vmem:[#allocation2 + $0x30] sm:$0xff]  ;;  %v204_v44 = vadd.s32 150, %v200_v38  ;;  %v328_v46 = vld [vmem:[#allocation2 + $0xc8] sm:$0xff]  ;;  %v311_v50 = vld [vmem:[#allocation2 + $0x40] sm:$0xff] }
  0x31   :  { %712 = vmatprep.subr.bf16.mxu0 %v711_v24  ;;  %v252_v47 = vld [vmem:[%s1084_s0 + $0xc] sm:$0xff]  ;;  %v721_v48 = vpack.c.bf16 %v310_v42, %v309_v41  ;;  %v723_v49 = vpack.c.bf16 %v328_v46, %v327_v45  ;;  %v58_v55 = vld [vmem:[%s1084_s0 + $0x18] sm:$0xff]  ;;  %v331_v0 = vld [vmem:[#allocation2 + $0xe0] sm:$0xff] }
  0x32   :  { %v312_v51 = vld [vmem:[#allocation2 + $0x48] sm:$0xff]  ;;  %v256_v52 = vadd.s32 200, %v252_v47  ;;  %v329_v53 = vld [vmem:[#allocation2 + $0xd0] sm:$0xff]  ;;  %v98_v57 = vld [vmem:[%s1084_s0 + $0x19] sm:$0xff] }
  0x33   :  { %714 = vmatpush3.bf16.msra.mxu0 %v713_v29  ;;  %v201_v56 = vld [vmem:[%s1084_s0 + $0x13] sm:$0xff]  ;;  %v725_v58 = vpack.c.bf16 %v312_v51, %v311_v50  ;;  %v727_v59 = vpack.c.bf16 %v330_v54, %v329_v53  ;;  %v102_v63 = vadd.s32 50, %v98_v57  ;;  %v332_v1 = vld [vmem:[#allocation2 + $0xe8] sm:$0xff]  ;;  %v315_v6 = vld [vmem:[#allocation2 + $0x60] sm:$0xff] }
  0x34   :  { %260 = vperm.xlu1 %773, %v255_v22   ;;  %159 = vperm.xlu0 %772, %v152_v23   ;;  %v313_v60 = vld [vmem:[#allocation2 + $0x50] sm:$0xff]  ;;  %v314_v61 = vld [vmem:[#allocation2 + $0x58] sm:$0xff]  ;;  %v205_v62 = vadd.s32 150, %v201_v56  ;;  %v731_v5 = vpack.c.bf16 %v332_v1, %v331_v0  ;;  %v316_v7 = vld [vmem:[#allocation2 + $0x68] sm:$0xff]  ;;  %v974_v22 = vand.u32 127, %v52_v21 }
  0x35   :  { %716 = vmatprep.subr.bf16.mxu0 %v715_v30  ;;  %v253_v2 = vld [vmem:[%s1084_s0 + $0x14] sm:$0xff]  ;;  %v729_v4 = vpack.c.bf16 %v314_v61, %v313_v60  ;;  %v254_v12 = vld [vmem:[%s1084_s0 + $0x1c] sm:$0xff]  ;;  %v733_v14 = vpack.c.bf16 %v316_v7, %v315_v6 }
  0x36   :  { %v150_v3 = vld [vmem:[%s1084_s0 + $0x1a] sm:$0xff]  ;;  %v257_v8 = vadd.s32 200, %v253_v2  ;;  %v333_v10 = vld [vmem:[#allocation2 + $0xf0] sm:$0xff]  ;;  %v258_v18 = vadd.s32 200, %v254_v12  ;;  %v977_v23 = vadd.s32 128, %v974_v22 }
  0x37   :  { %718 = vmatpush3.bf16.msra.mxu0 %v717_v39  ;;  %v154_v9 = vadd.s32 100, %v150_v3  ;;  %v334_v11 = vld [vmem:[#allocation2 + $0xf8] sm:$0xff]  ;;  %v317_v16 = vld [vmem:[#allocation2 + $0x70] sm:$0xff] }
  0x38   :  { %110 = vperm.xlu1 %773, %v101_v33   ;;  %66 = vperm.xlu0 %772, %v57_v36   ;;  %v202_v13 = vld [vmem:[%s1084_s0 + $0x1b] sm:$0xff]  ;;  %v735_v15 = vpack.c.bf16 %v334_v11, %v333_v10 }
  0x39   :  { %720 = vmatprep.subr.bf16.mxu0 %v719_v40  ;;  %v318_v17 = vld [vmem:[#allocation2 + $0x78] sm:$0xff]  ;;  %v206_v19 = vadd.s32 150, %v202_v13 }
  0x3a   :  { %v737_v20 = vpack.c.bf16 %v318_v17, %v317_v16 }
  0x3b   :  { %722 = vmatpush3.bf16.msra.mxu0 %v721_v48 }
  0x3c   :  { %162 = vperm.xlu1 %773, %v153_v43   ;;  %211 = vperm.xlu0 %772, %v204_v44  }
  0x3d   :  { %724 = vmatprep.subr.bf16.mxu0 %v723_v49 }
  0x3f   :  { %726 = vmatpush3.bf16.msra.mxu0 %v725_v58 }
  0x40   :  { %69 = vperm.xlu1 %773, %v58_v55   ;;  %263 = vperm.xlu0 %772, %v256_v52  }
  0x41   :  { %728 = vmatprep.subr.bf16.mxu0 %v727_v59 }
  0x43   :  { %730 = vmatpush3.bf16.msra.mxu0 %v729_v4 }
  0x44   :  { %214 = vperm.xlu1 %773, %v205_v62   ;;  %113 = vperm.xlu0 %772, %v102_v63  }
  0x45   :  { %732 = vmatprep.subr.bf16.mxu0 %v731_v5 }
  0x47   :  { %734 = vmatpush3.bf16.msra.mxu0 %v733_v14 }
  0x48   :  { %266 = vperm.xlu1 %773, %v257_v8   ;;  %165 = vperm.xlu0 %772, %v154_v9  }
  0x49   :  { %736 = vmatprep.subr.bf16.mxu0 %v735_v15 }
  0x4b   :  { %738 = vmatpush3.bf16.msra.mxu0 %v737_v20 }
  0x4c   :  { %269 = vperm.xlu1 %773, %v258_v18   ;;  %217 = vperm.xlu0 %772, %v206_v19  }
  0xa7   :  { %v64_v24 = vpop.permute.xlu1 %63  ;;  %v61_v25 = vpop.permute.xlu0 %60 }
  0xa8   :  { %vm71_vm0 = vcmp.eq.s32.totalorder %v974_v22, %v61_v25  ;;  %vm72_vm1 = vcmp.eq.s32.totalorder %v977_v23, %v61_v25  ;;  %vm73_vm12 = vcmp.eq.s32.totalorder %v974_v22, %v64_v24  ;;  %vm74_vm13 = vcmp.eq.s32.totalorder %v977_v23, %v64_v24 }
  0xa9   :  { %v568_v29 = vsel %vm71_vm0, 1.0, %v851_v28  ;;  %v569_v30 = vsel %vm72_vm1, 1.0, %v851_v28  ;;  %v570_v55 = vsel %vm73_vm12, 1.0, %v851_v28  ;;  %v571_v56 = vsel %vm74_vm13, 1.0, %v851_v28 }
  0xab   :  { %v157_v26 = vpop.permute.xlu1 %156  ;;  %v105_v27 = vpop.permute.xlu0 %104 }
  0xac   :  { %vm167_vm2 = vcmp.eq.s32.totalorder %v974_v22, %v157_v26  ;;  %vm115_vm3 = vcmp.eq.s32.totalorder %v974_v22, %v105_v27  ;;  %vm116_vm4 = vcmp.eq.s32.totalorder %v977_v23, %v105_v27  ;;  %vm168_vm5 = vcmp.eq.s32.totalorder %v977_v23, %v157_v26 }
  0xad   :  { %v576_v31 = vsel %vm115_vm3, 1.0, %v851_v28  ;;  %v577_v32 = vsel %vm116_vm4, 1.0, %v851_v28  ;;  %v584_v35 = vsel %vm167_vm2, 1.0, %v851_v28  ;;  %v585_v39 = vsel %vm168_vm5, 1.0, %v851_v28 }
  0xae   :  { %v139_v33 = vadd.f32 %v576_v31, %v568_v29  ;;  %v140_v34 = vadd.f32 %v577_v32, %v569_v30 }
  0xaf   :  { %v209_v36 = vpop.permute.xlu1 %208  ;;  %v108_v37 = vpop.permute.xlu0 %107 }
  0xb0   :  { %v191_v38 = vadd.f32 %v584_v35, %v139_v33  ;;  %vm219_vm6 = vcmp.eq.s32.totalorder %v974_v22, %v209_v36  ;;  %vm220_vm7 = vcmp.eq.s32.totalorder %v977_v23, %v209_v36  ;;  %v192_v42 = vadd.f32 %v585_v39, %v140_v34 }
  0xb1   :  { %v592_v40 = vsel %vm219_vm6, 1.0, %v851_v28  ;;  %v593_v41 = vsel %vm220_vm7, 1.0, %v851_v28  ;;  %vm117_vm8 = vcmp.eq.s32.totalorder %v974_v22, %v108_v37  ;;  %vm118_vm9 = vcmp.eq.s32.totalorder %v977_v23, %v108_v37 }
  0xb2   :  { %v243_v45 = vadd.f32 %v592_v40, %v191_v38  ;;  %v244_v47 = vadd.f32 %v593_v41, %v192_v42  ;;  %v578_v48 = vsel %vm117_vm8, 1.0, %v851_v28  ;;  %v579_v51 = vsel %vm118_vm9, 1.0, %v851_v28 }
  0xb3   :  { %v261_v43 = vpop.permute.xlu1 %260  ;;  %v160_v44 = vpop.permute.xlu0 %159  ;;  %v141_v57 = vadd.f32 %v578_v48, %v570_v55  ;;  %v142_v58 = vadd.f32 %v579_v51, %v571_v56  ;;  %v458_v56 = vld [vmem:[#allocation5] sm:$0xff] }
  0xb4   :  { %vm271_vm10 = vcmp.eq.s32.totalorder %v974_v22, %v261_v43  ;;  %vm272_vm11 = vcmp.eq.s32.totalorder %v977_v23, %v261_v43  ;;  %vm169_vm14 = vcmp.eq.s32.totalorder %v974_v22, %v160_v44  ;;  %vm170_vm15 = vcmp.eq.s32.totalorder %v977_v23, %v160_v44 }
  0xb5   :  { %v600_v46 = vsel %vm271_vm10, 1.0, %v851_v28  ;;  %v601_v50 = vsel %vm272_vm11, 1.0, %v851_v28  ;;  %v586_v59 = vsel %vm169_vm14, 1.0, %v851_v28  ;;  %v587_v60 = vsel %vm170_vm15, 1.0, %v851_v28 }
  0xb6   :  { %v295_v49 = vadd.f32 %v600_v46, %v243_v45  ;;  %v296_v54 = vadd.f32 %v601_v50, %v244_v47  ;;  %v193_v63 = vadd.f32 %v586_v59, %v141_v57  ;;  %v194_v0 = vadd.f32 %v587_v60, %v142_v58  ;;  %v460_v58 = vld [vmem:[#allocation5 + $0x10] sm:$0xff]  ;;  %v461_v59 = vld [vmem:[#allocation5 + $0x18] sm:$0xff] }
  0xb7   :  { %v111_v52 = vpop.permute.xlu1 %110  ;;  %v67_v53 = vpop.permute.xlu0 %66  ;;  %v743_v60 = vpack.c.bf16 %v461_v59, %v460_v58 }
  0xb8   :  { %406 = vmatprep.mubr.f32.mxu0 %v296_v54  ;;  %vm119_vm0 = vcmp.eq.s32.totalorder %v974_v22, %v111_v52  ;;  %vm120_vm1 = vcmp.eq.s32.totalorder %v977_v23, %v111_v52  ;;  %vm75_vm2 = vcmp.eq.s32.totalorder %v974_v22, %v67_v53  ;;  %vm76_vm3 = vcmp.eq.s32.totalorder %v977_v23, %v67_v53 }
  0xb9   :  { %407 = vmatmul.mubr.f32.vlgmr.msra.gmra.mrb[0].mxu0 %v295_v49  ;;  %v580_v3 = vsel %vm119_vm0, 1.0, %v851_v28  ;;  %v581_v4 = vsel %vm120_vm1, 1.0, %v851_v28  ;;  %v572_v5 = vsel %vm75_vm2, 1.0, %v851_v28  ;;  %v573_v6 = vsel %vm76_vm3, 1.0, %v851_v28 }
  0xba   :  { %v143_v13 = vadd.f32 %v580_v3, %v572_v5  ;;  %v144_v14 = vadd.f32 %v581_v4, %v573_v6  ;;  %v466_v3 = vld [vmem:[#allocation5 + $0x40] sm:$0xff]  ;;  %v467_v4 = vld [vmem:[#allocation5 + $0x48] sm:$0xff]  ;;  %v468_v6 = vld [vmem:[#allocation5 + $0x50] sm:$0xff] }
  0xbb   :  { %v163_v61 = vpop.permute.xlu1 %162  ;;  %v212_v62 = vpop.permute.xlu0 %211  ;;  %v752_v5 = vpack.c.bf16 %v467_v4, %v466_v3 }
  0xbc   :  { %vm171_vm4 = vcmp.eq.s32.totalorder %v974_v22, %v163_v61  ;;  %vm172_vm5 = vcmp.eq.s32.totalorder %v977_v23, %v163_v61  ;;  %vm221_vm6 = vcmp.eq.s32.totalorder %v974_v22, %v212_v62  ;;  %vm222_vm7 = vcmp.eq.s32.totalorder %v977_v23, %v212_v62  ;;  %v462_v61 = vld [vmem:[#allocation5 + $0x20] sm:$0xff]  ;;  %v463_v62 = vld [vmem:[#allocation5 + $0x28] sm:$0xff] }
  0xbd   :  { %v594_v1 = vsel %vm221_vm6, 1.0, %v851_v28  ;;  %v595_v2 = vsel %vm222_vm7, 1.0, %v851_v28  ;;  %v588_v7 = vsel %vm171_vm4, 1.0, %v851_v28  ;;  %v589_v8 = vsel %vm172_vm5, 1.0, %v851_v28 }
  0xbe   :  { %v245_v11 = vadd.f32 %v594_v1, %v193_v63  ;;  %v246_v12 = vadd.f32 %v595_v2, %v194_v0  ;;  %v195_v19 = vadd.f32 %v588_v7, %v143_v13  ;;  %v196_v20 = vadd.f32 %v589_v8, %v144_v14  ;;  %v464_v0 = vld [vmem:[#allocation5 + $0x30] sm:$0xff]  ;;  %v465_v1 = vld [vmem:[#allocation5 + $0x38] sm:$0xff] }
  0xbf   :  { %v70_v9 = vpop.permute.xlu1 %69  ;;  %v264_v10 = vpop.permute.xlu0 %263  ;;  %v746_v63 = vpack.c.bf16 %v463_v62, %v462_v61  ;;  %v749_v2 = vpack.c.bf16 %v465_v1, %v464_v0  ;;  %v469_v7 = vld [vmem:[#allocation5 + $0x58] sm:$0xff] }
  0xc0   :  { %vm273_vm8 = vcmp.eq.s32.totalorder %v974_v22, %v264_v10  ;;  %vm274_vm9 = vcmp.eq.s32.totalorder %v977_v23, %v264_v10  ;;  %vm77_vm10 = vcmp.eq.s32.totalorder %v974_v22, %v70_v9  ;;  %vm78_vm11 = vcmp.eq.s32.totalorder %v977_v23, %v70_v9  ;;  %v470_v9 = vld [vmem:[#allocation5 + $0x60] sm:$0xff]  ;;  %v471_v10 = vld [vmem:[#allocation5 + $0x68] sm:$0xff]  ;;  %v473_v13 = vld [vmem:[#allocation5 + $0x78] sm:$0xff] }
  0xc1   :  { %v602_v15 = vsel %vm273_vm8, 1.0, %v851_v28  ;;  %v603_v16 = vsel %vm274_vm9, 1.0, %v851_v28  ;;  %v574_v30 = vsel %vm77_vm10, 1.0, %v851_v28  ;;  %v575_v31 = vsel %vm78_vm11, 1.0, %v851_v28 }
  0xc2   :  { %v297_v17 = vadd.f32 %v602_v15, %v245_v11  ;;  %v298_v18 = vadd.f32 %v603_v16, %v246_v12  ;;  %v755_v8 = vpack.c.bf16 %v469_v7, %v468_v6  ;;  %v758_v11 = vpack.c.bf16 %v471_v10, %v470_v9  ;;  %v472_v12 = vld [vmem:[#allocation5 + $0x70] sm:$0xff] }
  0xc3   :  { %v215_v21 = vpop.permute.xlu1 %214  ;;  %v114_v24 = vpop.permute.xlu0 %113  ;;  %vm853_vm8 = vmmov 0   ;;  %v761_v14 = vpack.c.bf16 %v473_v13, %v472_v12  ;;  %vm453_vm9 = vcmask 1041409   ;;  %vm456_vm10 = vcmask 1041408  }
  0xc4   :  { %vm223_vm12 = vcmp.eq.s32.totalorder %v974_v22, %v215_v21  ;;  %vm224_vm13 = vcmp.eq.s32.totalorder %v977_v23, %v215_v21  ;;  %vm121_vm14 = vcmp.eq.s32.totalorder %v974_v22, %v114_v24  ;;  %vm122_vm15 = vcmp.eq.s32.totalorder %v977_v23, %v114_v24  ;;  %411 = vmatprep.mubr.f32.mxu0 %v298_v18  ;;  %v608_v18 = vld [vmem:[%s1086_s2] ss:$0 sm:$0xff] }
  0xc5   :  { %v596_v25 = vsel %vm223_vm12, 1.0, %v851_v28  ;;  %v597_v26 = vsel %vm224_vm13, 1.0, %v851_v28  ;;  %v582_v27 = vsel %vm121_vm14, 1.0, %v851_v28  ;;  %v583_v29 = vsel %vm122_vm15, 1.0, %v851_v28  ;;  %412 = vmatmul.mubr.f32.gmra.mrb[2].mxu0 %v297_v17  ;;  %704 = vmatprep.mubr.msk.f32.mxu1 %vm853_vm8, %v851_v28 }
  0xc6   :  { %v247_v32 = vadd.f32 %v596_v25, %v195_v19  ;;  %v248_v33 = vadd.f32 %v597_v26, %v196_v20  ;;  %v145_v34 = vadd.f32 %v582_v27, %v574_v30  ;;  %v146_v35 = vadd.f32 %v583_v29, %v575_v31  ;;  %v431_v26 = vld [vmem:[%s1087_s3] sm:$0xff]  ;;  %v432_v27 = vld [vmem:[%s1087_s3 + $0x8] sm:$0xff] }
  0xc7   :  { %v267_v36 = vpop.permute.xlu1 %266  ;;  %v166_v37 = vpop.permute.xlu0 %165 }
  0xc8   :  { %vm275_vm0 = vcmp.eq.s32.totalorder %v974_v22, %v267_v36  ;;  %vm276_vm1 = vcmp.eq.s32.totalorder %v977_v23, %v267_v36  ;;  %vm173_vm2 = vcmp.eq.s32.totalorder %v974_v22, %v166_v37  ;;  %vm174_vm3 = vcmp.eq.s32.totalorder %v977_v23, %v166_v37 }
  0xc9   :  { %v604_v38 = vsel %vm275_vm0, 1.0, %v851_v28  ;;  %v605_v39 = vsel %vm276_vm1, 1.0, %v851_v28  ;;  %v590_v40 = vsel %vm173_vm2, 1.0, %v851_v28  ;;  %v591_v41 = vsel %vm174_vm3, 1.0, %v851_v28 }
  0xca   :  { %v299_v42 = vadd.f32 %v604_v38, %v247_v32  ;;  %v300_v43 = vadd.f32 %v605_v39, %v248_v33  ;;  %v197_v44 = vadd.f32 %v590_v40, %v145_v34  ;;  %v198_v45 = vadd.f32 %v591_v41, %v146_v35 }
  0xcb   :  { %v270_v46 = vpop.permute.xlu1 %269  ;;  %v218_v47 = vpop.permute.xlu0 %217 }
  0xcc   :  { %vm277_vm4 = vcmp.eq.s32.totalorder %v974_v22, %v270_v46  ;;  %vm278_vm5 = vcmp.eq.s32.totalorder %v977_v23, %v270_v46  ;;  %vm225_vm6 = vcmp.eq.s32.totalorder %v974_v22, %v218_v47  ;;  %vm226_vm7 = vcmp.eq.s32.totalorder %v977_v23, %v218_v47  ;;  %416 = vmatprep.mubr.f32.mxu0 %v300_v43  ;;  %v459_v22 = vld [vmem:[#allocation5 + $0x8] sm:$0xff] }
  0xcd   :  { %v598_v48 = vsel %vm225_vm6, 1.0, %v851_v28  ;;  %v599_v49 = vsel %vm226_vm7, 1.0, %v851_v28  ;;  %417 = vmatmul.mubr.f32.gmra.mrb[4].mxu0 %v299_v42  ;;  %v606_v52 = vsel %vm277_vm4, 1.0, %v851_v28  ;;  %v607_v53 = vsel %vm278_vm5, 1.0, %v851_v28 }
  0xce   :  { %v249_v50 = vadd.f32 %v598_v48, %v197_v44  ;;  %v250_v51 = vadd.f32 %v599_v49, %v198_v45  ;;  %v740_v57 = vpack.c.bf16 %v459_v22, %v458_v56  ;;  %v852_v23 = vmov 0.0|0.0  }
  0xcf   :  { %739 = vmatprep.subr.bf16.mxu1 %v852_v23 }
  0xd0   :  { %v302_v54 = vadd.f32 %v607_v53, %v250_v51  ;;  %v301_v55 = vadd.f32 %v606_v52, %v249_v50  ;;  %741 = vmatpush3.bf16.msra.mxu1 %v740_v57 }
  0xd1   :  { %742 = vmatprep.subr.bf16.mxu1 %v852_v23 }
  0xd2   :  { %421 = vmatprep.mubr.f32.mxu0 %v302_v54 }
  0xd3   :  { %422 = vmatmul.mubr.f32.gmra.mrb[6].mxu0 %v301_v55 }
  0xd4   :  { %744 = vmatpush3.bf16.msra.mxu1 %v743_v60 }
  0xd5   :  { %745 = vmatprep.subr.bf16.mxu1 %v852_v23 }
  0xd8   :  { %747 = vmatpush3.bf16.msra.mxu1 %v746_v63 }
  0xd9   :  { %748 = vmatprep.subr.bf16.mxu1 %v852_v23 }
  0xdc   :  { %750 = vmatpush3.bf16.msra.mxu1 %v749_v2 }
  0xdd   :  { %751 = vmatprep.subr.bf16.mxu1 %v852_v23 }
  0xe0   :  { %753 = vmatpush3.bf16.msra.mxu1 %v752_v5 }
  0xe1   :  { %754 = vmatprep.subr.bf16.mxu1 %v852_v23 }
  0xe4   :  { %756 = vmatpush3.bf16.msra.mxu1 %v755_v8 }
  0xe5   :  { %757 = vmatprep.subr.bf16.mxu1 %v852_v23 }
  0xe8   :  { %759 = vmatpush3.bf16.msra.mxu1 %v758_v11 }
  0xe9   :  { %760 = vmatprep.subr.bf16.mxu1 %v852_v23  ;;  %v609_v23 = vld [vmem:[%s1089_s5] ss:$0 sm:$0xff] }
  0xec   :  { %762 = vmatpush3.bf16.msra.mxu1 %v761_v14 }
 0x18c   :  { %v643_v15 = vpop.f32.mrb[0].mxu0 }
 0x18d   :  { %v644_v16 = vpop.f32.mrb[1].mxu0 }
 0x18e   :  { %v645_v17 = vadd.f32 %v644_v16, %v643_v15 }
 0x190   :  { %v409_v19 = vadd.f32 %v645_v17, %v608_v18 }
 0x192   :  { %v427_v25 = vmax.f32 %v409_v19, 0.0 }
 0x194   :  { %v433_v30 = vmul.f32 %v431_v26, %v427_v25 }
 0x198   :  { %v646_v20 = vpop.f32.mrb[2].mxu0 }
 0x199   :  { %v647_v21 = vpop.f32.mrb[3].mxu0 }
 0x19a   :  { %v648_v24 = vadd.f32 %v647_v21, %v646_v20 }
 0x19c   :  { %v414_v28 = vadd.f32 %v648_v24, %v608_v18 }
 0x19e   :  { %v428_v29 = vmax.f32 %v414_v28, 0.0 }
 0x1a0   :  { %v434_v31 = vmul.f32 %v432_v27, %v428_v29  ;;  %v649_v32 = vpop.f32.mrb[4].mxu0 }
 0x1a1   :  { %v650_v33 = vpop.f32.mrb[5].mxu0 }
 0x1a2   :  { %v437_v34 = vmax.f32 %v433_v30, %v434_v31  ;;  %v651_v35 = vadd.f32 %v650_v33, %v649_v32 }
 0x1a4   :  { %v419_v36 = vadd.f32 %v651_v35, %v608_v18  ;;  %v438_v39 = vrot.slane %v437_v34, 4 }
 0x1a6   :  { %v652_v37 = vpop.f32.mrb[6].mxu0  ;;  %v429_v41 = vmax.f32 %v419_v36, 0.0  ;;  %v439_v43 = vmax.f32 %v437_v34, %v438_v39 }
 0x1a7   :  { %v653_v38 = vpop.f32.mrb[7].mxu0 }
 0x1a8   :  { %v654_v40 = vadd.f32 %v653_v38, %v652_v37  ;;  %v435_v45 = vmul.f32 %v431_v26, %v429_v41  ;;  %v440_v47 = vrot.slane %v439_v43, 2 }
 0x1aa   :  { %v424_v42 = vadd.f32 %v654_v40, %v608_v18  ;;  %v441_v51 = vmax.f32 %v439_v43, %v440_v47 }
 0x1ac   :  { %v430_v44 = vmax.f32 %v424_v42, 0.0  ;;  %v442_v53 = vrot.slane %v441_v51, 1 }
 0x1ae   :  { %v436_v46 = vmul.f32 %v432_v27, %v430_v44  ;;  %v443_v56 = vmax.f32 %v441_v51, %v442_v53 }
 0x1b0   :  { %v444_v48 = vmax.f32 %v435_v45, %v436_v46 }
 0x1b2   :  { %v445_v49 = vrot.slane %v444_v48, 4 }
 0x1b4   :  { %v446_v50 = vmax.f32 %v444_v48, %v445_v49 }
 0x1b6   :  { %v447_v52 = vrot.slane %v446_v50, 2 }
 0x1b8   :  { %v448_v54 = vmax.f32 %v446_v50, %v447_v52 }
 0x1ba   :  { %v449_v55 = vrot.slane %v448_v54, 1 }
 0x1bc   :  { %v450_v22 = vmax.f32 %v448_v54, %v449_v55 }
 0x1be   :  { %v454_v57 = vsel %vm453_vm9, %v450_v22, %v443_v56 }
 0x1bf   :  { %705 = vmatmul.mubr.msk.f32.vlgmr.msra.gmra.mrb[0].mxu1 %vm456_vm10, %v454_v57 }
 0x292   :  { %v547_v58 = vpop.f32.mrb[0].mxu1 }
 0x293   :  { %v548_v59 = vadd.f32 %v609_v23, %v547_v58  ;;  %v706_v60 = vpop.f32.mrb[1].mxu1 }
 0x295   :  { %551 = vst [vmem:[#allocation7] sm:$0xff] %v548_v59 }
 0x296   :  { %829 = shalt.err (!%p826_p6)
}
 0x297   :  { %s830_s1 = scalar_lea.hbm %s1090_s6, 128 }
 0x298   :  { %p831_p7 = scmp.ne.s32.totalorder %s1090_s6, %s830_s1  ;;  %p834_p8 = scmp.lt.u32.totalorder %s830_s1, %s1090_s6 }
 0x29a   :  { %p836_p9 = pnand %p834_p8, %p831_p7 }
 0x29c   :  { %839 = shalt.err (!%p836_p9)
}
 0x29d   :  { %561 = dma.vmem_to_hbm [thread:$0]  %s559_s17, 128, %s1090_s6, [#allocation4]  }
 0x29e   :  { %844 = dma.done.wait [#allocation4], 128  }
 0x29f   :  { %845 = vsyncadd [#allocation4], 4294967168 }
 0x2a0   :  { %565 = vsyncpa [#allocation3], 1 }
 0x2a1   :  { %566 = vsyncpa [#allocation6], 1 }
 0x2a2   :  { %567 = vsyncpa [#allocation4], 1 }

</bundles_post_ra>
